<compile_context>
chip_gen: v6e
topology: v6e:2x2x1
jax: 0.10.0
libtpu: 0.0.40
codegen_flags: <defaults>
</compile_context>

<pallas_src>
import functools
import math

import jax
import jax.numpy as jnp
from jax.experimental import pallas as pl
from jax.experimental.pallas import tpu as pltpu


def _resgated_kernel(a_ref, y1_ref, y234_ref, out_ref, acc_ref, *,
                     out_d, tile_k, y234_resident):
    j = pl.program_id(1)

    if y234_resident:
        # Whole Y234 is resident in VMEM (constant index_map); slice the src block.
        start = pl.multiple_of(j * tile_k, tile_k)
        y234 = y234_ref[pl.ds(start, tile_k), :]
    else:
        y234 = y234_ref[...]

    # Message-passing partial sum for this (tgt block, src block) adjacency tile.
    # A is bf16 in HBM (exact integer counts); accumulate in f32.
    partial = jnp.dot(a_ref[...].astype(jnp.float32), y234,
                      preferred_element_type=jnp.float32)

    @pl.when(j == 0)
    def _first():
        acc_ref[...] = partial          # direct write: no zero-init VPU pass

    @pl.when(j > 0)
    def _accum():
        acc_ref[...] += partial

    @pl.when(j == pl.num_programs(1) - 1)
    def _finalize():
        m = acc_ref[...]
        m2 = m[:, 0 * out_d:1 * out_d]
        m3 = m[:, 1 * out_d:2 * out_d]
        m4 = m[:, 2 * out_d:3 * out_d]
        out_ref[...] = (jax.nn.sigmoid(m3 + m4) * m2
                        + y1_ref[...]).astype(out_ref.dtype)


def _round_up(v, m):
    return -(-v // m) * m


def resgated_conv(x, src, tgt, W1, b1, W2, b2, W3, b3, W4, b4, *,
                  tile_m=512, tile_k=512,
                  y234_resident_bytes=8 * 1024 * 1024):
    """x: [N, in_d]; src/tgt: int32 [E]; Wk: [in_d, out_d]; bk: [out_d]."""
    N, in_d = x.shape
    out_d = W1.shape[1]

    # ---- Hoisted fused projections (one lane-dense XLA matmul, not per grid step).
    W_all = jnp.concatenate([W1, W2, W3, W4], axis=1)
    b_all = jnp.concatenate([b1, b2, b3, b4]).reshape(1, -1)
    Y = (x @ W_all + b_all).astype(jnp.float32)
    Y1 = Y[:, :out_d]
    Y234 = Y[:, out_d:]

    # ---- Dense message-pass operator with the add_self 2x factor folded in.
    # Values are 2 * integer multi-edge counts -> exactly representable in bf16.
    A = (2.0 * jnp.zeros((N, N), jnp.float32).at[tgt, src].add(1.0)
         ).astype(jnp.bfloat16)

    # ---- Node tiling: tgt axis (i) parallel, src axis (j) reduction (innermost).
    base = max(8, _round_up(N, 8))
    tm = tile_m if N > tile_m else base
    tk = tile_k if N > tile_k else base
    n_pad = _round_up(N, max(tm, tk))
    if n_pad % tm:                       # only possible for odd user tile combos
        tm = n_pad
    if n_pad % tk:
        tk = n_pad
    # v7x megacore: keep >= 2 tgt blocks when there is enough work to split.
    if n_pad // tm == 1 and n_pad >= 256 and (n_pad // 2) % 8 == 0:
        tm = n_pad // 2

    if n_pad != N:
        pad = n_pad - N
        Y1 = jnp.pad(Y1, ((0, pad), (0, 0)))
        Y234 = jnp.pad(Y234, ((0, pad), (0, 0)))
        A = jnp.pad(A, ((0, pad), (0, pad)))

    n_blk_m = n_pad // tm
    n_blk_k = n_pad // tk

    # Keep the whole Y234 resident in VMEM when small (skips per-tgt-block re-reads);
    # otherwise stream (tk, 3*out_d) blocks keyed on j.
    y234_bytes = n_pad * 3 * out_d * 4
    y234_resident = (n_blk_k > 1) and (y234_bytes <= y234_resident_bytes)
    if y234_resident:
        y234_spec = pl.BlockSpec((n_pad, 3 * out_d), lambda i, j: (0, 0))
    else:
        y234_spec = pl.BlockSpec((tk, 3 * out_d), lambda i, j: (j, 0))

    kernel = functools.partial(_resgated_kernel, out_d=out_d, tile_k=tk,
                               y234_resident=y234_resident)

    # Advisory cost estimate at actual dtypes (A read once in bf16; Y234 read once if
    # resident else once per tgt block; Y1 read + out written once).
    flops = 2 * n_pad * n_pad * 3 * out_d
    y234_reads = 1 if (y234_resident or n_blk_m == 1) else n_blk_m
    bytes_accessed = (n_pad * n_pad * 2
                      + y234_reads * n_pad * 3 * out_d * 4
                      + 2 * n_pad * out_d * 4)

    # VMEM budget: double-buffered A/Y1/out + acc + Y234; cap at 48 MiB (v7x-safe),
    # floor at 32 MiB.  v5e/v6e (128 MiB VMEM) have plenty of headroom at these tiles.
    vmem_est = (2 * tm * tk * 2                      # A, bf16, double-buffered
                + 2 * tm * out_d * 4                 # Y1
                + 2 * tm * out_d * 4                 # out
                + tm * 3 * out_d * 4                 # accumulator
                + (2 * y234_bytes if y234_resident else 2 * tk * 3 * out_d * 4))
    vmem_limit = int(min(48 * 1024 * 1024, max(32 * 1024 * 1024, 2 * vmem_est)))

    out = pl.pallas_call(
        kernel,
        out_shape=jax.ShapeDtypeStruct((n_pad, out_d), x.dtype),
        grid_spec=pltpu.PrefetchScalarGridSpec(
            num_scalar_prefetch=0,
            grid=(n_blk_m, n_blk_k),
            in_specs=[
                pl.BlockSpec((tm, tk), lambda i, j: (i, j)),      # A tile (bf16)
                pl.BlockSpec((tm, out_d), lambda i, j: (i, 0)),   # Y1 (tgt block)
                y234_spec,                                        # Y234 (src side)
            ],
            out_specs=pl.BlockSpec((tm, out_d), lambda i, j: (i, 0)),
            scratch_shapes=[pltpu.VMEM((tm, 3 * out_d), jnp.float32)],
        ),
        compiler_params=pltpu.CompilerParams(
            dimension_semantics=("parallel", "arbitrary"),
            vmem_limit_bytes=vmem_limit,
        ),
        cost_estimate=pl.CostEstimate(
            flops=flops,
            transcendentals=n_pad * out_d,
            bytes_accessed=bytes_accessed,
        ),
    )(A, Y1, Y234)

    return out[:N]


def ref_forward(x, src, tgt, W1, b1, W2, b2, W3, b3, W4, b4):
    """Pure-JAX reference mirroring the PyTorch module."""
    def mp(y):
        y = y + y                                   # add_self
        msg = y[src]                                # index_select on rows
        return jnp.zeros_like(y).at[tgt].add(msg)   # scatter_add on rows

    x1 = x @ W1 + b1
    x2 = mp(x @ W2 + b2)
    x3 = mp(x @ W3 + b3)
    x4 = mp(x @ W4 + b4)
    return jax.nn.sigmoid(x3 + x4) * x2 + x1


if __name__ == "__main__":
    root = jax.random.PRNGKey(0)

    def run_case(key, n_nodes, in_d, out_d, n_edges, **kw):
        keys = jax.random.split(key, 11)
        bound = 1.0 / (in_d ** 0.5)

        def lin(kw_, kb_):  # nn.Linear init, weights stored as [in_d, out_d]
            W = jax.random.uniform(kw_, (in_d, out_d), jnp.float32, -bound, bound)
            b = jax.random.uniform(kb_, (out_d,), jnp.float32, -bound, bound)
            return W, b

        W1, b1 = lin(keys[0], keys[1])
        W2, b2 = lin(keys[2], keys[3])
        W3, b3 = lin(keys[4], keys[5])
        W4, b4 = lin(keys[6], keys[7])

        x = jax.random.normal(keys[8], (n_nodes, in_d), jnp.float32)
        src = jax.random.randint(keys[9], (n_edges,), 0, n_nodes, jnp.int32)   # edge_idx[0]
        tgt = jax.random.randint(keys[10], (n_edges,), 0, n_nodes, jnp.int32)  # edge_idx[1]

        out = resgated_conv(x, src, tgt, W1, b1, W2, b2, W3, b3, W4, b4, **kw)
        out = jax.block_until_ready(out)

        ref = ref_forward(x, src, tgt, W1, b1, W2, b2, W3, b3, W4, b4)
        assert out.shape == ref.shape
        assert jnp.allclose(out, ref, atol=1e-4, rtol=1e-4), "mismatch vs JAX reference"

    k1, k2, k3, k4 = jax.random.split(root, 4)
    # Small case matching the module docstring: BS=2, 8 nodes, in_d=8, out_d=32, 24 edges.
    run_case(k1, 2 * 8, 8, 32, 24)
    # Larger case: exercises the 2-tgt-block megacore split with default tiles.
    run_case(k2, 256, 8, 32, 512)
    # Multi-block (2x2) grid with Y234 resident in VMEM (reduction + finalize path).
    run_case(k3, 256, 8, 32, 512, tile_m=128, tile_k=128)
    # Same grid, streaming Y234 blocks (non-resident path).
    run_case(k4, 256, 8, 32, 512, tile_m=128, tile_k=128, y234_resident_bytes=0)

    print("KERNEL_OK")
</pallas_src>

<mosaic_0001>
module attributes {stable_mosaic.version = 11 : i64} {
  func.func @_resgated_kernel(%arg0: i32, %arg1: i32, %arg2: memref<16x16xbf16, #tpu.memory_space<vmem>>, %arg3: memref<16x32xf32, #tpu.memory_space<vmem>>, %arg4: memref<16x96xf32, #tpu.memory_space<vmem>>, %arg5: memref<16x32xf32, #tpu.memory_space<vmem>>, %arg6: memref<16x96xf32, #tpu.memory_space<vmem>>) attributes {dimension_semantics = [#tpu.dimension_semantics<parallel>, #tpu.dimension_semantics<arbitrary>], iteration_bounds = array<i64: 1, 1>, scalar_prefetch = 0 : i64, scratch_operands = 1 : i64, tpu.core_type = #tpu.core_type<tc>, window_params = [{transform_indices = @transform_0, window_bounds = array<i64: 16, 16>}, {transform_indices = @transform_1, window_bounds = array<i64: 16, 32>}, {transform_indices = @transform_2, window_bounds = array<i64: 16, 96>}, {transform_indices = @transform_3, window_bounds = array<i64: 16, 32>}]} {
    %c0 = arith.constant 0 : index
    %c0_0 = arith.constant 0 : index
    %0 = vector.load %arg4[%c0, %c0_0] : memref<16x96xf32, #tpu.memory_space<vmem>>, vector<16x96xf32>
    %c0_1 = arith.constant 0 : index
    %c0_2 = arith.constant 0 : index
    %1 = vector.load %arg2[%c0_1, %c0_2] : memref<16x16xbf16, #tpu.memory_space<vmem>>, vector<16x16xbf16>
    %2 = arith.extf %1 : vector<16x16xbf16> to vector<16x16xf32>
    %cst = arith.constant dense<0.000000e+00> : vector<16x96xf32>
    %3 = tpu.matmul %2, %0, %cst {dimension_numbers = #tpu.dot_dimension_numbers<[1], [0], [0], [1], [0, 0, 1, 1], [], []>} : vector<16x16xf32>, vector<16x96xf32>, vector<16x96xf32> -> vector<16x96xf32>
    %c0_i32 = arith.constant 0 : i32
    %4 = arith.cmpi eq, %arg1, %c0_i32 : i32
    %5 = arith.extui %4 : i1 to i32
    %c0_i32_3 = arith.constant 0 : i32
    %6 = arith.cmpi ne, %5, %c0_i32_3 : i32
    scf.if %6 {
      %c0_8 = arith.constant 0 : index
      %c0_9 = arith.constant 0 : index
      %13 = vector.load %arg6[%c0_8, %c0_9] : memref<16x96xf32, #tpu.memory_space<vmem>>, vector<16x96xf32>
      tpu.vector_store %arg6[%c0_8, %c0_9], %3 {strides = array<i32>} : memref<16x96xf32, #tpu.memory_space<vmem>>, vector<16x96xf32>,
    } else {
    }
    %c0_i32_4 = arith.constant 0 : i32
    %7 = arith.cmpi sgt, %arg1, %c0_i32_4 : i32
    %8 = arith.extui %7 : i1 to i32
    %c0_i32_5 = arith.constant 0 : i32
    %9 = arith.cmpi ne, %8, %c0_i32_5 : i32
    scf.if %9 {
      %c0_8 = arith.constant 0 : index
      %c0_9 = arith.constant 0 : index
      %13 = vector.load %arg6[%c0_8, %c0_9] : memref<16x96xf32, #tpu.memory_space<vmem>>, vector<16x96xf32>
      %14 = arith.addf %13, %3 : vector<16x96xf32>
      %c0_10 = arith.constant 0 : index
      %c0_11 = arith.constant 0 : index
      %15 = vector.load %arg6[%c0_10, %c0_11] : memref<16x96xf32, #tpu.memory_space<vmem>>, vector<16x96xf32>
      tpu.vector_store %arg6[%c0_10, %c0_11], %14 {strides = array<i32>} : memref<16x96xf32, #tpu.memory_space<vmem>>, vector<16x96xf32>,
    } else {
    }
    %c0_i32_6 = arith.constant 0 : i32
    %10 = arith.cmpi eq, %arg1, %c0_i32_6 : i32
    %11 = arith.extui %10 : i1 to i32
    %c0_i32_7 = arith.constant 0 : i32
    %12 = arith.cmpi ne, %11, %c0_i32_7 : i32
    scf.if %12 {
      %c0_8 = arith.constant 0 : index
      %c0_9 = arith.constant 0 : index
      %13 = vector.load %arg6[%c0_8, %c0_9] : memref<16x96xf32, #tpu.memory_space<vmem>>, vector<16x96xf32>
      %14 = vector.extract_strided_slice %13 {offsets = [0, 0], sizes = [16, 32], strides = [1, 1]} : vector<16x96xf32> to vector<16x32xf32>
      %15 = vector.extract_strided_slice %13 {offsets = [0, 32], sizes = [16, 32], strides = [1, 1]} : vector<16x96xf32> to vector<16x32xf32>
      %16 = vector.extract_strided_slice %13 {offsets = [0, 64], sizes = [16, 32], strides = [1, 1]} : vector<16x96xf32> to vector<16x32xf32>
      %17 = arith.addf %15, %16 : vector<16x32xf32>
      %18 = arith.negf %17 : vector<16x32xf32>
      %19 = math.exp %18 : vector<16x32xf32>
      %cst_10 = arith.constant 1.000000e+00 : f32
      %20 = vector.broadcast %cst_10 : f32 to vector<16x32xf32>
      %21 = arith.addf %20, %19 : vector<16x32xf32>
      %22 = arith.divf %20, %21 : vector<16x32xf32>
      %23 = arith.mulf %22, %14 : vector<16x32xf32>
      %c0_11 = arith.constant 0 : index
      %c0_12 = arith.constant 0 : index
      %24 = vector.load %arg3[%c0_11, %c0_12] : memref<16x32xf32, #tpu.memory_space<vmem>>, vector<16x32xf32>
      %25 = arith.addf %23, %24 : vector<16x32xf32>
      %c0_13 = arith.constant 0 : index
      %c0_14 = arith.constant 0 : index
      %26 = vector.load %arg5[%c0_13, %c0_14] : memref<16x32xf32, #tpu.memory_space<vmem>>, vector<16x32xf32>
      tpu.vector_store %arg5[%c0_13, %c0_14], %25 {strides = array<i32>} : memref<16x32xf32, #tpu.memory_space<vmem>>, vector<16x32xf32>,
    } else {
    }
    return
  }
  func.func @transform_0(%arg0: i32, %arg1: i32) -> (i32, i32) {
    %c0_i32 = arith.constant 0 : i32
    return %arg0, %arg1 : i32, i32
  }
  func.func @transform_1(%arg0: i32, %arg1: i32) -> (i32, i32) {
    %c0_i32 = arith.constant 0 : i32
    %c0_i32_0 = arith.constant 0 : i32
    return %arg0, %c0_i32 : i32, i32
  }
  func.func @transform_2(%arg0: i32, %arg1: i32) -> (i32, i32) {
    %c0_i32 = arith.constant 0 : i32
    %c0_i32_0 = arith.constant 0 : i32
    return %arg1, %c0_i32 : i32, i32
  }
  func.func @transform_3(%arg0: i32, %arg1: i32) -> (i32, i32) {
    %c0_i32 = arith.constant 0 : i32
    %c0_i32_0 = arith.constant 0 : i32
    return %arg0, %c0_i32 : i32, i32
  }
}

</mosaic_0001>

<bundles_post_ra>
// kernel: tpu_custom_call.1
= control target key start
LH: loop header
LB: loop body
LE: loop exit
PB: predicated region body
PF: predicated region fallthrough
CT: control target
= control target key end

     0   :  { %8 = vsyncpa [#allocation4], 0  ;;  %s416_s0 = inlined_call_operand.hbm [shape: bf16[16,16], index: 0, kind: input, shape index: {}]   ;;  %s417_s1 = inlined_call_operand.hbm [shape: f32[16,32], index: 1, kind: input, shape index: {}]   ;;  %s418_s2 = inlined_call_operand.hbm [shape: f32[16,96], index: 2, kind: input, shape index: {}]   ;;  %s419_s3 = inlined_call_operand.hbm [shape: f32[16,32], index: 3, kind: output, shape index: {}]  }
   0x1   :  { %9 = vsyncpa [#allocation7], 0 }
   0x2   :  { %10 = vsyncpa [#allocation5], 0  ;;  %s361_s12 = smov [#allocation6]  }
   0x3   :  { %s28_s13 = sshll.u32 %s361_s12, 4  ;;  %s29_s13 = int_to_ptr.vmem [resolvable:$true] %s28_s13 }
   0x4   :  { %s283_s14 = scalar_lea.vmem %s29_s13, 256  ;;  %p288_p1 = scmp.lt.s32.totalorder %s29_s13, %s29_s13 }
   0x5   :  { %p284_p0 = scmp.ne.s32.totalorder %s29_s13, %s283_s14  ;;  %p289_p2 = scmp.lt.s32.totalorder %s283_s14, %s283_s14 }
   0x7   :  { %p290_p3 = por %p289_p2, %p288_p1 }
   0x9   :  { %p291_p4 = pnand %p290_p3, %p284_p0 }
   0xb   :  { %294 = shalt.err (!%p291_p4)
}
   0xc   :  { %s362_s15 = smov 128   ;;  %s363_s16 = smov 8  }
   0xd   :  { %34 = dma.hbm_to_vmem [thread:$0]  %s417_s1, 256, %s29_s13, [#allocation7], %s362_s15, %s362_s15, %s363_s16  }
   0xe   :  { %s364_s19 = smov [#allocation3]  }
   0xf   :  { %s16_s20 = sshll.u32 %s364_s19, 4  ;;  %s17_s20 = int_to_ptr.vmem [resolvable:$true] %s16_s20 }
  0x10   :  { %s303_s21 = scalar_lea.vmem %s17_s20, 128  ;;  %p308_p6 = scmp.lt.s32.totalorder %s17_s20, %s17_s20 }
  0x11   :  { %p304_p5 = scmp.ne.s32.totalorder %s17_s20, %s303_s21  ;;  %p309_p7 = scmp.lt.s32.totalorder %s303_s21, %s303_s21 }
  0x13   :  { %p310_p8 = por %p309_p7, %p308_p6 }
  0x15   :  { %p311_p9 = pnand %p310_p8, %p304_p5 }
  0x17   :  { %314 = shalt.err (!%p311_p9)
}
  0x18   :  { %s365_s22 = smov 64   ;;  %s366_s23 = smov 4  }
  0x19   :  { %22 = dma.hbm_to_vmem [thread:$0]  %s416_s0, 128, %s17_s20, [#allocation4], %s365_s22, %s365_s22, %s366_s23  }
  0x1a   :  { %s367_s26 = smov [#allocation8]  }
  0x1b   :  { %s40_s27 = sshll.u32 %s367_s26, 4  ;;  %s41_s27 = int_to_ptr.vmem [resolvable:$true] %s40_s27 }
  0x1c   :  { %s323_s1 = scalar_lea.vmem %s41_s27, 256  ;;  %p328_p11 = scmp.lt.s32.totalorder %s41_s27, %s41_s27 }
  0x1d   :  { %p324_p10 = scmp.ne.s32.totalorder %s41_s27, %s323_s1  ;;  %p329_p12 = scmp.lt.s32.totalorder %s323_s1, %s323_s1 }
  0x1f   :  { %p330_p13 = por %p329_p12, %p328_p11 }
  0x21   :  { %p331_p0 = pnand %p330_p13, %p324_p10 }
  0x23   :  { %334 = shalt.err (!%p331_p0)
}
  0x24   :  { %46 = dma.hbm_to_vmem [thread:$0]  %s418_s2, 256, %s41_s27, [#allocation7], %s362_s15, %s362_s15, %s363_s16  }
  0x25   :  { %355 = dma.done.wait [#allocation4], 128  }
  0x26   :  { %356 = vsyncadd [#allocation4], 4294967168 }
  0x27   :  { %357 = dma.done.wait [#allocation7], 512  }
  0x28   :  { %358 = vsyncadd [#allocation7], 4294966784  ;;  %v57_v0 = vld [vmem:[#allocation8 + $0x8] sm:$0xff]  ;;  %v56_v1 = vld [vmem:[#allocation8] sm:$0xff]  ;;  %vm62_vm0 = vcmask 130048   ;;  %vm148_vm1 = vcmask 785408  }
  0x29   :  { %v243_v2 = vld [vmem:[#allocation3] sm:$0xff]   ;;  %250 = vmatprep.subr.mxu0 %v57_v0  ;;  %s368_s0 = smov 32   ;;  %s369_s2 = smov 96   ;;  %v198_v9 = vld [vmem:[#allocation6 + $0x8] sm:$0xff]  ;;  %v197_v10 = vld [vmem:[#allocation6] sm:$0xff]  ;;  %vm217_vm2 = vcmask 261120  }
  0x2a   :  { %v244_v3 = vunpack.c.l.bf16 %v243_v2  ;;  %v245_v4 = vunpack.c.h.bf16 %v243_v2  ;;  %251 = vmatpush3.msra.mxu0 %v57_v0  ;;  %s370_s30 = smov [#allocation9]  }
  0x2b   :  { %252 = vmatprep.subr.mxu0 %v56_v1  ;;  %s225_s4 = sshll.u32 %s370_s30, 4  ;;  %s226_s4 = int_to_ptr.vmem [resolvable:$true] %s225_s4 }
  0x2c   :  { %254 = vmatprep.mubr.msk.f32.mxu0 %vm62_vm0, %v244_v3  ;;  %253 = vmatpush3.msra.mxu0 %v56_v1  ;;  %s335_s5 = scalar_lea.vmem %s226_s4, 256  ;;  %p340_p2 = scmp.lt.s32.totalorder %s226_s4, %s226_s4 }
  0x2d   :  { %255 = vmatmul.mubr.msk.f32.vlgmr.msra.gmra.mxu0 %vm62_vm0, %v245_v4  ;;  %p336_p1 = scmp.ne.s32.totalorder %s226_s4, %s335_s5  ;;  %p341_p3 = scmp.lt.s32.totalorder %s335_s5, %s335_s5 }
  0x2f   :  { %p342_p4 = por %p341_p3, %p340_p2 }
  0x31   :  { %p343_p5 = pnand %p342_p4, %p336_p1 }
  0xed   :  { %v256_v5 = vpop.f32.mrf.mxu0 }
  0xee   :  { %150 = vst.msk [vmem:[#allocation2 + $0x8] sm:$0xff] %vm148_vm1, %v256_v5 }
  0xef   :  { %v135_v6 = vpop.f32.mrf.mxu0 }
  0xf0   :  { %149 = vst.msk [vmem:[#allocation2] sm:$0xff] %vm148_vm1, %v135_v6 }
  0xf5   :  { %v166_v7 = vld [vmem:[#allocation2 + $0x8] sm:$0xff] }
  0xf6   :  { %191 = vrot.lane.b32.xlu1 %v166_v7, %s368_s0 }
  0xf7   :  { %v165_v8 = vld [vmem:[#allocation2] sm:$0xff] }
  0xf8   :  { %169 = vrot.lane.b32.xlu0 %v165_v8, %s369_s2 }
  0xfa   :  { %189 = vrot.lane.b32.xlu1 %v165_v8, %s368_s0 }
  0xfc   :  { %171 = vrot.lane.b32.xlu0 %v166_v7, %s369_s2 }
  0xfe   :  { %203 = vrot.lane.b32.xlu1 %v198_v9, %s368_s0 }
 0x100   :  { %201 = vrot.lane.b32.xlu0 %v197_v10, %s368_s0 }
 0x168   :  { %v192_v21 = vpop.permute.xlu1 %191 }
 0x16a   :  { %v170_v11 = vpop.permute.xlu0 %169 }
 0x16b   :  { %v175_v12 = vadd.f32 %v170_v11, %v165_v8 }
 0x16c   :  { %v190_v23 = vpop.permute.xlu1 %189 }
 0x16d   :  { %v240_v13 = vmul.f32 -1.442695, %v175_v12 }
 0x16e   :  { %v172_v14 = vpop.permute.xlu0 %171 }
 0x16f   :  { %267 = vpow2.f32 %v240_v13  ;;  %v176_v15 = vadd.f32 %v172_v14, %v166_v7 }
 0x170   :  { %v204_v28 = vpop.permute.xlu1 %203 }
 0x171   :  { %v241_v16 = vmul.f32 -1.442695, %v176_v15 }
 0x172   :  { %v202_v24 = vpop.permute.xlu0 %201 }
 0x173   :  { %269 = vpow2.f32 %v241_v16 }
 0x17c   :  { %v268_v17 = vpop.eup %267 }
 0x17d   :  { %v183_v18 = vadd.f32 1.0, %v268_v17 }
 0x17f   :  { %271 = vrcp.f32 %v183_v18 }
 0x180   :  { %v270_v19 = vpop.eup %269 }
 0x181   :  { %v184_v20 = vadd.f32 1.0, %v270_v19 }
 0x183   :  { %273 = vrcp.f32 %v184_v20 }
 0x18c   :  { %v272_v22 = vpop.eup %271 }
 0x18d   :  { %v195_v25 = vmul.f32 %v272_v22, %v190_v23 }
 0x18f   :  { %v207_v26 = vadd.f32 %v202_v24, %v195_v25 }
 0x190   :  { %v274_v27 = vpop.eup %273 }
 0x191   :  { %211 = vrot.lane.b32.xlu0 %v207_v26, %s369_s2  ;;  %v196_v29 = vmul.f32 %v274_v27, %v192_v21 }
 0x193   :  { %v208_v30 = vadd.f32 %v204_v28, %v196_v29 }
 0x195   :  { %213 = vrot.lane.b32.xlu1 %v208_v30, %s369_s2 }
 0x203   :  { %v212_v31 = vpop.permute.xlu0 %211 }
 0x204   :  { %218 = vst.msk [vmem:[#allocation9] sm:$0xff] %vm217_vm2, %v212_v31 }
 0x207   :  { %v214_v32 = vpop.permute.xlu1 %213 }
 0x208   :  { %219 = vst.msk [vmem:[#allocation9 + $0x8] sm:$0xff] %vm217_vm2, %v214_v32 }
 0x209   :  { %346 = shalt.err (!%p343_p5)
}
 0x20a   :  { %231 = dma.vmem_to_hbm [thread:$0]  %s226_s4, 256, %s419_s3, [#allocation5], %s362_s15, %s362_s15, %s363_s16  }
 0x20b   :  { %359 = dma.done.wait [#allocation5], 256  }
 0x20c   :  { %360 = vsyncadd [#allocation5], 4294967040 }
 0x20d   :  { %235 = vsyncpa [#allocation4], 1 }
 0x20e   :  { %236 = vsyncpa [#allocation7], 1 }
 0x20f   :  { %237 = vsyncpa [#allocation5], 1 }

</bundles_post_ra>
